<compile_context>
chip_gen: v5e
topology: v5e:2x2
jax: 0.10.0
libtpu: 0.0.40
codegen_flags: <defaults>
</compile_context>

<pallas_src>
import functools

import jax
import jax.numpy as jnp
from jax.experimental import pallas as pl
from jax.experimental.pallas import tpu as pltpu

_MIB = 1024 * 1024


# ---------------------------------------------------------------------------
# Helpers: generation-aware VMEM budget and tile choosers.
# ---------------------------------------------------------------------------
def _round_up(x, m):
    return ((x + m - 1) // m) * m


def _vmem_limit_bytes():
    """Scoped-VMEM budget: half of physical (64 MiB v5e/v6e, 32 MiB v7x)."""
    try:
        cap = int(pltpu.get_tpu_info().vmem_capacity_bytes)
    except Exception:                       # query unavailable -> be conservative
        cap = 64 * _MIB                     # v7x-sized assumption
    return min(cap // 2, 64 * _MIB)


def _sep_block_vmem_bytes(tn, th, W, out_itemsize, sub):
    """Layout-padded VMEM footprint of one (output + EY + EX) block set."""
    lanes = _round_up(W, 128)
    rows = _round_up(th, sub)
    out_b = tn * rows * lanes * out_itemsize          # (tn, th, W) output block
    ey_b = tn * rows * 128 * 4                        # (tn, th, 1): lanes pad to 128
    ex_b = tn * 8 * lanes * 4                         # (tn, 1, W): sublanes pad to 8
    return out_b + ey_b + ex_b


def _choose_tiles_separable(N, H, W, out_itemsize, vmem_limit):
    sub = max(8, 32 // out_itemsize)                  # sublane quantum for out dtype
    # One block set is double-buffered, so it may use ~half the scoped limit.
    target_block = min(vmem_limit // 2, 16 * _MIB)    # 16 MiB v5e/v6e, 8 MiB v7x
    row_bytes = _round_up(W, 128) * out_itemsize
    rows_budget = max(sub, target_block // row_bytes)     # tn*th rows per block
    th = H if rows_budget >= H else max(sub, (rows_budget // sub) * sub)
    tn = max(1, min(N, rows_budget // max(th, 1)))
    # Keep >= 2 grid steps along a "parallel" axis so both v7x TCs get work.
    if pl.cdiv(N, tn) * pl.cdiv(H, th) < 2:
        if N >= 2:
            tn = pl.cdiv(N, 2)
        else:
            half = max(sub, _round_up(pl.cdiv(H, 2), sub))
            if half < H:
                th = half
    # Safety: shrink until the double-buffered working set fits the limit.
    while tn > 1 and 2 * _sep_block_vmem_bytes(tn, th, W, out_itemsize, sub) > vmem_limit:
        tn = max(1, tn // 2)
    while th > sub and 2 * _sep_block_vmem_bytes(tn, th, W, out_itemsize, sub) > vmem_limit:
        th = max(sub, (th // 2 // sub) * sub)
    return tn, th


def _choose_tiles_fallback(N, H, W, out_itemsize, vmem_limit):
    sub = max(8, 32 // out_itemsize)
    lanes = _round_up(W, 128)
    target = min(vmem_limit // 2, 16 * _MIB)
    tn = min(N, 8)                                    # EUP-bound: modest N batch
    per_row = 2 * lanes * 4 + tn * lanes * out_itemsize   # 2 coord rows + tn out rows
    rows = max(sub, target // per_row)
    th = H if rows >= H else max(sub, (rows // sub) * sub)
    if pl.cdiv(N, tn) * pl.cdiv(H, th) < 2:
        if N >= 2:
            tn = pl.cdiv(N, 2)
        else:
            half = max(sub, _round_up(pl.cdiv(H, 2), sub))
            if half < H:
                th = half
    return tn, th


# ---------------------------------------------------------------------------
# Fast path: separable (meshgrid) coordinates.
# out[n, h, w] = EY[n, h] * EX[n, w]  (amplitude and exp folded into EY/EX).
# ---------------------------------------------------------------------------
def _gaussian2d_separable_kernel(n_total, ey_ref, ex_ref, out_ref):
    # ey_ref: (TN, TH, 1), ex_ref: (TN, 1, W), out_ref: (TN, TH, W)
    tn = out_ref.shape[0]
    n0 = pl.program_id(0) * tn

    def body(i, carry):
        # Ragged last-N block: skip padded gaussians instead of computing and
        # storing duplicates that writeback clipping would discard anyway.
        @pl.when(n0 + i < n_total)
        def _():
            out_ref[i] = (ey_ref[i] * ex_ref[i]).astype(out_ref.dtype)  # (TH, W)
        return carry

    # Fixed partial unroll: never compile the loop un-unrolled, so the LLO
    # scheduler can interleave multiplies/stores of neighbouring gaussians.
    jax.lax.fori_loop(0, tn, body, 0, unroll=min(tn, 8))


# ---------------------------------------------------------------------------
# Fallback: arbitrary (non-separable) coordinate grid, tiled over (N, H).
# ---------------------------------------------------------------------------
def _gaussian2d_plane_kernel(n_total, amp_ref, cy_ref, cx_ref, i2sy_ref,
                             i2sx_ref, gy_ref, gx_ref, out_ref):
    # gy_ref/gx_ref: (TH, W) coordinate tiles; out_ref: (TN, TH, W)
    tn = out_ref.shape[0]
    n0 = pl.program_id(0) * tn

    def body(i, carry):
        @pl.when(n0 + i < n_total)
        def _():
            n = n0 + i
            dy = gy_ref[...] - cy_ref[n]
            dx = gx_ref[...] - cx_ref[n]
            # TODO(synk): on v6e/v7x the exp could run in bf16 (~2x EUP) when
            # callers accept the precision loss; kept f32 to match the module.
            g = amp_ref[n] * jnp.exp(-(dx * dx * i2sx_ref[n] + dy * dy * i2sy_ref[n]))
            out_ref[i] = g.astype(out_ref.dtype)
        return carry

    jax.lax.fori_loop(0, tn, body, 0, unroll=min(tn, 4))


# ---------------------------------------------------------------------------
# Wrapper.
# ---------------------------------------------------------------------------
def _is_separable_grid(grid):
    """True iff grid[...,0] varies only along h and grid[...,1] only along w
    (a standard meshgrid).  Forces a host sync; under jit pass `separable=`
    explicitly to avoid the silent (slower) fallback."""
    gy = grid[..., 0]
    gx = grid[..., 1]
    return bool(jnp.all(gy == gy[:, :1]) & jnp.all(gx == gx[:1, :]))


def gaussian2d_forward(grid, amplitude, center_y, center_x, sigma_y, sigma_x,
                       *, separable=None, out_dtype=jnp.float32):
    """grid: (H, W, 2) in yx order; params: (N,). Returns (N, H, W).

    out_dtype=jnp.bfloat16 halves HBM write traffic (~2x wall-clock on the
    write-bound fast path) for callers that can tolerate it.
    """
    H, W, _ = grid.shape
    N = amplitude.shape[0]
    itemsize = jnp.dtype(out_dtype).itemsize
    vmem_limit = _vmem_limit_bytes()

    # Tiny N-element parameter glue (pure JAX): no divides left in any kernel.
    amp = amplitude.astype(jnp.float32)
    cy = center_y.astype(jnp.float32)
    cx = center_x.astype(jnp.float32)
    i2sy2 = 0.5 / (sigma_y.astype(jnp.float32) ** 2)
    i2sx2 = 0.5 / (sigma_x.astype(jnp.float32) ** 2)

    if separable is None:
        try:
            separable = _is_separable_grid(grid)
        except (jax.errors.ConcretizationTypeError,
                jax.errors.TracerBoolConversionError):
            separable = False   # under jit: pass separable=True explicitly

    if separable:
        tn, th = _choose_tiles_separable(N, H, W, itemsize, vmem_limit)
        y = grid[:, 0, 0].astype(jnp.float32)            # (H,)
        x = grid[0, :, 1].astype(jnp.float32)            # (W,)
        # Lane-dense O(N*(H+W)) tables: all exps + amplitude hoisted here, so
        # the per-pixel kernel is a pure VPU broadcast-multiply + store.
        dy = y[None, :] - cy[:, None]                    # (N, H)
        dx = x[None, :] - cx[:, None]                    # (N, W)
        ey = (amp[:, None] * jnp.exp(-(dy * dy) * i2sy2[:, None]))[:, :, None]  # (N,H,1)
        ex = (jnp.exp(-(dx * dx) * i2sx2[:, None]))[:, None, :]                 # (N,1,W)
        return pl.pallas_call(
            functools.partial(_gaussian2d_separable_kernel, N),
            out_shape=jax.ShapeDtypeStruct((N, H, W), out_dtype),
            grid=(pl.cdiv(N, tn), pl.cdiv(H, th)),
            in_specs=[pl.BlockSpec((tn, th, 1), lambda ni, hi: (ni, hi, 0)),
                      pl.BlockSpec((tn, 1, W), lambda ni, hi: (ni, 0, 0))],
            out_specs=pl.BlockSpec((tn, th, W), lambda ni, hi: (ni, hi, 0)),
            compiler_params=pltpu.CompilerParams(
                dimension_semantics=("parallel", "parallel"),
                vmem_limit_bytes=vmem_limit),
        )(ey, ex)

    # Non-separable fallback: full exp per pixel, tiled over (N, H).
    tn, th = _choose_tiles_fallback(N, H, W, itemsize, vmem_limit)
    gy_plane = grid[..., 0].astype(jnp.float32)
    gx_plane = grid[..., 1].astype(jnp.float32)
    smem = pl.BlockSpec(memory_space=pltpu.MemorySpace.SMEM)
    coord = pl.BlockSpec((th, W), lambda ni, hi: (hi, 0))
    return pl.pallas_call(
        functools.partial(_gaussian2d_plane_kernel, N),
        out_shape=jax.ShapeDtypeStruct((N, H, W), out_dtype),
        grid=(pl.cdiv(N, tn), pl.cdiv(H, th)),
        in_specs=[smem, smem, smem, smem, smem, coord, coord],
        out_specs=pl.BlockSpec((tn, th, W), lambda ni, hi: (ni, hi, 0)),
        compiler_params=pltpu.CompilerParams(
            dimension_semantics=("parallel", "parallel"),
            vmem_limit_bytes=vmem_limit),
    )(amp, cy, cx, i2sy2, i2sx2, gy_plane, gx_plane)


def gaussian2d_reference(grid, amplitude, center_y, center_x, sigma_y, sigma_x):
    # Pure-JAX reference matching the torch/einops forward exactly.
    gy = grid[..., 0][:, :, None]            # (H, W, 1)
    gx = grid[..., 1][:, :, None]            # (H, W, 1)
    amp = amplitude[None, None, :]           # (1, 1, N)
    cy = center_y[None, None, :]
    cx = center_x[None, None, :]
    sy = sigma_y[None, None, :]
    sx = sigma_x[None, None, :]
    g = amp * jnp.exp(-((gx - cx) ** 2 / (2 * sx ** 2)
                        + (gy - cy) ** 2 / (2 * sy ** 2)))
    return jnp.transpose(g, (2, 0, 1))       # (N, H, W)


if __name__ == "__main__":
    key = jax.random.PRNGKey(0)
    H, W, N = 16, 16, 5                       # N=5 exercises the ragged-N guard

    # Coordinate grid in yx order, shape (H, W, 2) — like torch.meshgrid output.
    ys = jnp.arange(H, dtype=jnp.float32)
    xs = jnp.arange(W, dtype=jnp.float32)
    gy, gx = jnp.meshgrid(ys, xs, indexing="ij")
    grid = jnp.stack([gy, gx], axis=-1)       # (H, W, 2)

    # Deterministic parameter init (shapes from Gaussian2D.__init__, all (N,)).
    k1, k2, k3, k4, k5 = jax.random.split(key, 5)
    amplitude = 1.0 + jax.random.uniform(k1, (N,), dtype=jnp.float32)
    center_y = jax.random.uniform(k2, (N,), dtype=jnp.float32) * (H - 1)
    center_x = jax.random.uniform(k3, (N,), dtype=jnp.float32) * (W - 1)
    sigma_y = 1.0 + jax.random.uniform(k4, (N,), dtype=jnp.float32) * 2.0
    sigma_x = 1.0 + jax.random.uniform(k5, (N,), dtype=jnp.float32) * 2.0

    ref = gaussian2d_reference(grid, amplitude, center_y, center_x,
                               sigma_y, sigma_x)

    # Fast separable path (explicit flag: no host sync, no silent fallback).
    out = jax.block_until_ready(
        gaussian2d_forward(grid, amplitude, center_y, center_x,
                           sigma_y, sigma_x, separable=True))
    assert out.shape == (N, H, W)
    assert jnp.allclose(out, ref, atol=1e-5, rtol=1e-5)

    # Auto-detection path (concrete meshgrid -> separable fast path).
    out_auto = jax.block_until_ready(
        gaussian2d_forward(grid, amplitude, center_y, center_x,
                           sigma_y, sigma_x))
    assert jnp.allclose(out_auto, ref, atol=1e-5, rtol=1e-5)

    # bf16 output (halves write traffic on the write-bound fast path).
    out_bf16 = jax.block_until_ready(
        gaussian2d_forward(grid, amplitude, center_y, center_x, sigma_y,
                           sigma_x, separable=True, out_dtype=jnp.bfloat16))
    assert jnp.allclose(out_bf16.astype(jnp.float32), ref, atol=3e-2, rtol=3e-2)

    # General-grid fallback (rotated, non-separable coordinates).
    c, s = jnp.cos(0.3), jnp.sin(0.3)
    grid_rot = jnp.stack([c * gy - s * gx, s * gy + c * gx], axis=-1)
    out_rot = jax.block_until_ready(
        gaussian2d_forward(grid_rot, amplitude, center_y, center_x,
                           sigma_y, sigma_x, separable=False))
    ref_rot = gaussian2d_reference(grid_rot, amplitude, center_y, center_x,
                                   sigma_y, sigma_x)
    assert jnp.allclose(out_rot, ref_rot, atol=1e-5, rtol=1e-5)

    print("KERNEL_OK")
</pallas_src>

<mosaic_0001>
module attributes {stable_mosaic.version = 11 : i64} {
  func.func @_gaussian2d_separable_kernel(%arg0: i32, %arg1: i32, %arg2: memref<3x16x1xf32, #tpu.memory_space<vmem>>, %arg3: memref<3x1x16xf32, #tpu.memory_space<vmem>>, %arg4: memref<3x16x16xf32, #tpu.memory_space<vmem>>) attributes {dimension_semantics = [#tpu.dimension_semantics<parallel>, #tpu.dimension_semantics<parallel>], iteration_bounds = array<i64: 2, 1>, scalar_prefetch = 0 : i64, scratch_operands = 0 : i64, tpu.core_type = #tpu.core_type<tc>, window_params = [{transform_indices = @transform_0, window_bounds = array<i64: 3, 16, 1>}, {transform_indices = @transform_1, window_bounds = array<i64: 3, 1, 16>}, {transform_indices = @transform_2, window_bounds = array<i64: 3, 16, 16>}]} {
    %c3_i32 = arith.constant 3 : i32
    %0 = arith.muli %arg0, %c3_i32 : i32
    %c0_i32 = arith.constant 0 : i32
    %1 = arith.addi %0, %c0_i32 : i32
    %c5_i32 = arith.constant 5 : i32
    %2 = arith.cmpi slt, %1, %c5_i32 : i32
    %3 = arith.extui %2 : i1 to i32
    %c0_i32_0 = arith.constant 0 : i32
    %4 = arith.cmpi ne, %3, %c0_i32_0 : i32
    scf.if %4 {
      %13 = arith.index_cast %c0_i32 : i32 to index
      %c0 = arith.constant 0 : index
      %c0_6 = arith.constant 0 : index
      %14 = vector.load %arg2[%13, %c0, %c0_6] : memref<3x16x1xf32, #tpu.memory_space<vmem>>, vector<1x16x1xf32>
      %15 = vector.shape_cast %14 : vector<1x16x1xf32> to vector<16x1xf32>
      %16 = arith.index_cast %c0_i32 : i32 to index
      %c0_7 = arith.constant 0 : index
      %c0_8 = arith.constant 0 : index
      %17 = vector.load %arg3[%16, %c0_7, %c0_8] : memref<3x1x16xf32, #tpu.memory_space<vmem>>, vector<1x1x16xf32>
      %18 = vector.shape_cast %17 : vector<1x1x16xf32> to vector<1x16xf32>
      %19 = vector.broadcast %15 : vector<16x1xf32> to vector<16x16xf32>
      %20 = vector.broadcast %18 : vector<1x16xf32> to vector<16x16xf32>
      %21 = arith.mulf %19, %20 : vector<16x16xf32>
      %22 = arith.index_cast %c0_i32 : i32 to index
      %c0_9 = arith.constant 0 : index
      %c0_10 = arith.constant 0 : index
      %23 = vector.load %arg4[%22, %c0_9, %c0_10] : memref<3x16x16xf32, #tpu.memory_space<vmem>>, vector<1x16x16xf32>
      %24 = vector.shape_cast %23 : vector<1x16x16xf32> to vector<16x16xf32>
      %25 = vector.shape_cast %21 : vector<16x16xf32> to vector<1x16x16xf32>
      tpu.vector_store %arg4[%22, %c0_9, %c0_10], %25 {strides = array<i32>} : memref<3x16x16xf32, #tpu.memory_space<vmem>>, vector<1x16x16xf32>,
    } else {
    }
    %c1_i32 = arith.constant 1 : i32
    %5 = arith.addi %0, %c1_i32 : i32
    %c5_i32_1 = arith.constant 5 : i32
    %6 = arith.cmpi slt, %5, %c5_i32_1 : i32
    %7 = arith.extui %6 : i1 to i32
    %c0_i32_2 = arith.constant 0 : i32
    %8 = arith.cmpi ne, %7, %c0_i32_2 : i32
    scf.if %8 {
      %13 = arith.index_cast %c1_i32 : i32 to index
      %c0 = arith.constant 0 : index
      %c0_6 = arith.constant 0 : index
      %14 = vector.load %arg2[%13, %c0, %c0_6] : memref<3x16x1xf32, #tpu.memory_space<vmem>>, vector<1x16x1xf32>
      %15 = vector.shape_cast %14 : vector<1x16x1xf32> to vector<16x1xf32>
      %16 = arith.index_cast %c1_i32 : i32 to index
      %c0_7 = arith.constant 0 : index
      %c0_8 = arith.constant 0 : index
      %17 = vector.load %arg3[%16, %c0_7, %c0_8] : memref<3x1x16xf32, #tpu.memory_space<vmem>>, vector<1x1x16xf32>
      %18 = vector.shape_cast %17 : vector<1x1x16xf32> to vector<1x16xf32>
      %19 = vector.broadcast %15 : vector<16x1xf32> to vector<16x16xf32>
      %20 = vector.broadcast %18 : vector<1x16xf32> to vector<16x16xf32>
      %21 = arith.mulf %19, %20 : vector<16x16xf32>
      %22 = arith.index_cast %c1_i32 : i32 to index
      %c0_9 = arith.constant 0 : index
      %c0_10 = arith.constant 0 : index
      %23 = vector.load %arg4[%22, %c0_9, %c0_10] : memref<3x16x16xf32, #tpu.memory_space<vmem>>, vector<1x16x16xf32>
      %24 = vector.shape_cast %23 : vector<1x16x16xf32> to vector<16x16xf32>
      %25 = vector.shape_cast %21 : vector<16x16xf32> to vector<1x16x16xf32>
      tpu.vector_store %arg4[%22, %c0_9, %c0_10], %25 {strides = array<i32>} : memref<3x16x16xf32, #tpu.memory_space<vmem>>, vector<1x16x16xf32>,
    } else {
    }
    %c2_i32 = arith.constant 2 : i32
    %9 = arith.addi %0, %c2_i32 : i32
    %c5_i32_3 = arith.constant 5 : i32
    %10 = arith.cmpi slt, %9, %c5_i32_3 : i32
    %11 = arith.extui %10 : i1 to i32
    %c0_i32_4 = arith.constant 0 : i32
    %12 = arith.cmpi ne, %11, %c0_i32_4 : i32
    scf.if %12 {
      %13 = arith.index_cast %c2_i32 : i32 to index
      %c0 = arith.constant 0 : index
      %c0_6 = arith.constant 0 : index
      %14 = vector.load %arg2[%13, %c0, %c0_6] : memref<3x16x1xf32, #tpu.memory_space<vmem>>, vector<1x16x1xf32>
      %15 = vector.shape_cast %14 : vector<1x16x1xf32> to vector<16x1xf32>
      %16 = arith.index_cast %c2_i32 : i32 to index
      %c0_7 = arith.constant 0 : index
      %c0_8 = arith.constant 0 : index
      %17 = vector.load %arg3[%16, %c0_7, %c0_8] : memref<3x1x16xf32, #tpu.memory_space<vmem>>, vector<1x1x16xf32>
      %18 = vector.shape_cast %17 : vector<1x1x16xf32> to vector<1x16xf32>
      %19 = vector.broadcast %15 : vector<16x1xf32> to vector<16x16xf32>
      %20 = vector.broadcast %18 : vector<1x16xf32> to vector<16x16xf32>
      %21 = arith.mulf %19, %20 : vector<16x16xf32>
      %22 = arith.index_cast %c2_i32 : i32 to index
      %c0_9 = arith.constant 0 : index
      %c0_10 = arith.constant 0 : index
      %23 = vector.load %arg4[%22, %c0_9, %c0_10] : memref<3x16x16xf32, #tpu.memory_space<vmem>>, vector<1x16x16xf32>
      %24 = vector.shape_cast %23 : vector<1x16x16xf32> to vector<16x16xf32>
      %25 = vector.shape_cast %21 : vector<16x16xf32> to vector<1x16x16xf32>
      tpu.vector_store %arg4[%22, %c0_9, %c0_10], %25 {strides = array<i32>} : memref<3x16x16xf32, #tpu.memory_space<vmem>>, vector<1x16x16xf32>,
    } else {
    }
    %c3_i32_5 = arith.constant 3 : i32
    return
  }
  func.func @transform_0(%arg0: i32, %arg1: i32) -> (i32, i32, i32) {
    %c0_i32 = arith.constant 0 : i32
    %c0_i32_0 = arith.constant 0 : i32
    return %arg0, %arg1, %c0_i32 : i32, i32, i32
  }
  func.func @transform_1(%arg0: i32, %arg1: i32) -> (i32, i32, i32) {
    %c0_i32 = arith.constant 0 : i32
    %c0_i32_0 = arith.constant 0 : i32
    %c0_i32_1 = arith.constant 0 : i32
    return %arg0, %c0_i32, %c0_i32_0 : i32, i32, i32
  }
  func.func @transform_2(%arg0: i32, %arg1: i32) -> (i32, i32, i32) {
    %c0_i32 = arith.constant 0 : i32
    %c0_i32_0 = arith.constant 0 : i32
    return %arg0, %arg1, %c0_i32 : i32, i32, i32
  }
}

</mosaic_0001>

<bundles_post_ra>
// kernel: tpu_custom_call.1
= control target key start
LH: loop header
LB: loop body
LE: loop exit
PB: predicated region body
PF: predicated region fallthrough
CT: control target
= control target key end

     0   :  { %7 = vsyncpa [#allocation3], 0  ;;  %s819_s0 = inlined_call_operand.vmem [shape: f32[5,16,1], index: 0, kind: input, shape index: {}]   ;;  %s820_s1 = inlined_call_operand.vmem [shape: f32[5,1,16], index: 1, kind: input, shape index: {}]   ;;  %s821_s2 = inlined_call_operand.hbm [shape: f32[5,16,16], index: 2, kind: output, shape index: {}]  }
   0x1   :  { %9 = vsyncpa [#allocation3 + $0x1], 0  ;;  %s658_s9 = smov 0   ;;  %s660_s10 = smov 0  }
   0x2   :  { %s662_s11 = smov 0   ;;  %s664_s12 = smov 0  }
   0x3   :  { %s666_s13 = smov 0   ;;  %s668_s14 = smov 0  }
   0x4 LB: > { %s443_s15 = sadd.s32 4294967295, %s635_s14   ;;  %s444_s16 = sadd.s32 4294967294, %s635_s14   ;;  %s635_s14 = sphi %s668_s14, %s15_s14   ;;  %s631_s13 = sphi %s666_s13, %s829_s13   ;;  %s627_s12 = sphi %s664_s12, %s828_s12   ;;  %s623_s11 = sphi %s662_s11, %s827_s11   ;;  %s619_s10 = sphi %s660_s10, %s826_s10   ;;  %s615_s9 = sphi %s658_s9, %s825_s9  }
   0x5   : > { %s27_s17 = sadd.s32 1, %s631_s13  ;;  %s90_s18 = sadd.s32 1, %s623_s11 }
   0x6   : > { %p29_p0 = scmp.ge.s32.totalorder %s27_s17, 2  ;;  %p100_p1 = scmp.ne.s32.totalorder %s623_s11, %s619_s10 }
   0x7   : > { %p101_p2 = scmp.eq.s32.totalorder %s443_s15, 1  ;;  %p106_p3 = scmp.ne.s32.totalorder %s619_s10, %s615_s9 }
   0x8   : > { %s831_s17 = smov (%p29_p0, %s27_s17), 0  ;;  %p107_p5 = scmp.eq.s32.totalorder %s444_s16, 1 }
   0x9   : > { %p698_p4 = por %p101_p2, %p100_p1  ;;  %s85_s20 = ssub.s32 %s631_s13, %s831_s17 }
   0xa   : > { %p447_p6 = scmp.ge.s32.totalorder %s635_s14, 1  ;;  %p88_p7 = scmp.eq.s32.totalorder %s85_s20, 0 }
   0xb   : > { %p705_p8 = por %p107_p5, %p106_p3  ;;  %p164_p9 = scmp.lt.s32.totalorder %s635_s14, 3 }
   0xc   : > { %s711_s22 = scalar_select %p88_p7, %s623_s11, %s90_s18  }
   0xd   : > { %p165_p10 = pnand %p447_p6, %p164_p9 }
   0xe   : > { %s200_s23 = sand.u32 (!%p165_p10), 1, %s619_s10   ;;  %s715_s24 = smul.u32 (!%p165_p10), 3, %s627_s12 }
   0xf   : > { %168 = sbr.rel (%p165_p10) target bundleno = 462 (0x1ce), region = 28 }
  0x10   : > { %s480_s25 = smul.u32 (!%p165_p10), 48, %s200_s23  ;;  %p210_p11 = scmp.lt.s32.totalorder (!%p165_p10), %s715_s24, 4 }
  0x11   : > { %p450_p12 = scmp.ge.s32.totalorder (!%p165_p10), %s715_s24, 5 }
  0x12   : > { %s731_s6 = scalar_lea.vmem (!%p165_p10), [#allocation2], %s480_s25 }
  0x14   : > { %s211_s26 = scalar_select %p210_p11, %s715_s24, 4 }
  0x15   : > { %247 = sbr.rel (%p450_p12) target bundleno = 154 (0x9a), region = 32 }
  0x16   : > { %s473_s27 = sshll.u32 %s211_s26, 4  ;;  %s724_s30 = scalar_lea.vmem %s820_s1, %s211_s26 }
  0x17   : > { %s729_s5 = scalar_lea.vmem %s819_s0, %s473_s27 }
  0x1a   : > { %v248_v0 = vld [vmem:[%s729_s5] sm:$0xff]  ;;  %v637_v1 = vmov 0   ;;  %v249_v2 = vld [vmem:[%s729_s5 + $0x8] sm:$0xff]  ;;  %vm266_vm0 = vcmask 130048  }
  0x1b   : > { %540 = vset.pattern.permute.xlu0 %v637_v1  ;;  %v541_v3 = vld [vmem:[%s724_s30] ss:$0 sm:$0xff] }
  0x1c   : > { %253 = vperm.xlu0 %540, %v248_v0  }
  0x24   : > { %258 = vperm.xlu0 %540, %v249_v2  }
  0x8e   : > { %v254_v4 = vpop.permute.xlu0 %253 }
  0x8f   : > { %v264_v5 = vmul.f32 %v541_v3, %v254_v4 }
  0x91   : > { %267 = vst.msk [vmem:[%s731_s6] sm:$0xff] %vm266_vm0, %v264_v5 }
  0x96   : > { %v259_v6 = vpop.permute.xlu0 %258 }
  0x97   : > { %v265_v7 = vmul.f32 %v541_v3, %v259_v6 }
  0x99   : > { %268 = vst.msk [vmem:[%s731_s6 + $0x8] sm:$0xff] %vm266_vm0, %v265_v7 }
  0x9a PF: > { %s269_s7 = sadd.s32 1, %s715_s24 }
  0x9b   : > { %p451_p13 = scmp.ge.s32.totalorder %s269_s7, 5 }
  0x9d   : > { %273 = sbr.rel (%p451_p13) target bundleno = 290 (0x122), region = 36 }
  0xa2   : > { %v452_v8 = vld [vmem:[%s729_s5 + $0x10] sm:$0xff]  ;;  %v638_v9 = vmov 0   ;;  %v453_v10 = vld [vmem:[%s729_s5 + $0x18] sm:$0xff]  ;;  %v543_v11 = vld [vmem:[%s724_s30 + $0x1] ss:$0 sm:$0xff]  ;;  %vm295_vm1 = vcmask 130048  }
  0xa3   : > { %542 = vset.pattern.permute.xlu0 %v638_v9 }
  0xa4   : > { %281 = vperm.xlu0 %542, %v452_v8  }
  0xac   : > { %286 = vperm.xlu0 %542, %v453_v10  }
 0x116   : > { %v282_v12 = vpop.permute.xlu0 %281 }
 0x117   : > { %v292_v13 = vmul.f32 %v543_v11, %v282_v12 }
 0x119   : > { %455 = vst.msk [vmem:[%s731_s6 + $0x10] sm:$0xff] %vm295_vm1, %v292_v13 }
 0x11e   : > { %v287_v14 = vpop.permute.xlu0 %286 }
 0x11f   : > { %v293_v15 = vmul.f32 %v543_v11, %v287_v14 }
 0x121   : > { %456 = vst.msk [vmem:[%s731_s6 + $0x18] sm:$0xff] %vm295_vm1, %v293_v15 }
 0x122 PF: > { %s298_s8 = sadd.s32 2, %s715_s24 }
 0x123   : > { %p457_p0 = scmp.ge.s32.totalorder %s298_s8, 5 }
 0x125   : > { %302 = sbr.rel (%p457_p0) target bundleno = 426 (0x1aa), region = 40 }
 0x12a   : > { %v458_v16 = vld [vmem:[%s729_s5 + $0x20] sm:$0xff]  ;;  %v639_v17 = vmov 0   ;;  %v459_v18 = vld [vmem:[%s729_s5 + $0x28] sm:$0xff]  ;;  %vm324_vm2 = vcmask 130048  }
 0x12b   : > { %544 = vset.pattern.permute.xlu0 %v639_v17  ;;  %v545_v19 = vld [vmem:[%s724_s30 + $0x2] ss:$0 sm:$0xff] }
 0x12c   : > { %310 = vperm.xlu0 %544, %v458_v16  }
 0x134   : > { %315 = vperm.xlu0 %544, %v459_v18  }
 0x19e   : > { %v311_v20 = vpop.permute.xlu0 %310 }
 0x19f   : > { %v321_v21 = vmul.f32 %v545_v19, %v311_v20 }
 0x1a1   : > { %461 = vst.msk [vmem:[%s731_s6 + $0x20] sm:$0xff] %vm324_vm2, %v321_v21 }
 0x1a6   : > { %v316_v22 = vpop.permute.xlu0 %315 }
 0x1a7   : > { %v322_v23 = vmul.f32 %v545_v19, %v316_v22 }
 0x1a9   : > { %462 = vst.msk [vmem:[%s731_s6 + $0x28] sm:$0xff] %vm324_vm2, %v322_v23 }
 0x1aa PF: > { %s753_s15 = scalar_lea.sflag [#allocation3], %s200_s23  ;;  %334 = sbr.rel (!%p698_p4) target bundleno = 462 (0x1ce), region = 44 }
 0x1ab   : > { %s337_s16 = ssub.s32 (%p698_p4), 5, %s715_s24 }
 0x1ac   : > { %p338_p1 = scmp.lt.s32.totalorder (%p698_p4), %s337_s16, 3 }
 0x1af   : > { %s833_s16 = smov (!%p338_p1, %s337_s16), 3 }
 0x1b0   : > { %s474_s18 = sshll.u32 %s833_s16, 4 }
 0x1b1   : > { %s342_s20 = ssub.s32 48, %s474_s18 }
 0x1b2   : > { %s343_s25 = sshll.u32 %s342_s20, 4 }
 0x1b3   : > { %344 = vsyncadd %s753_s15, %s343_s25  ;;  %p762_p2 = scmp.ne.s32.totalorder %s474_s18, 0  ;;  %s479_s19 = smul.u32 48, %s627_s12 }
 0x1b4   : > { %s352_s26 = sshll.u32 %s731_s6, 4  ;;  %s478_s24 = sshll.u32 %s833_s16, 8  ;;  %s772_s26 = int_to_ptr.vmem [resolvable:$true] %s352_s26 }
 0x1b5   : > { %s349_s29 = scalar_lea.hbm %s821_s2, %s479_s19  ;;  %s546_s3 = sshra.s32 %s772_s26, 4  ;;  %s547_s3 = int_to_ptr.vmem [resolvable:$true] %s546_s3 }
 0x1b6   : > { %s354_s30 = sshll.u32 %s349_s29, 4  ;;  %s548_s4 = sshrl.u32 %s478_s24, 4  ;;  %s774_s30 = int_to_ptr.hbm [resolvable:$true] %s354_s30 }
 0x1b7   : > { %s553_s5 = scalar_lea.vmem %s547_s3, %s548_s4  ;;  %s640_s12 = smov [#allocation2]  }
 0x1b8   : > { %p554_p3 = scmp.ne.s32.totalorder %s547_s3, %s553_s5  ;;  %s557_s6 = scalar_lea.vmem %s640_s12, 96 }
 0x1b9   : > { %p559_p6 = scmp.lt.s32.totalorder %s557_s6, %s553_s5 }
 0x1ba   : > { %p555_p4 = pnand %p554_p3, %p762_p2 }
 0x1bc   : > { %p556_p5 = pneg %p555_p4 }
 0x1be   : > { %p561_p7 = pnand %p559_p6, %p556_p5 }
 0x1c0   : > { %564 = shalt.err (!%p561_p7)
}
 0x1c1   : > { %s565_s7 = sshra.s32 %s774_s30, 4  ;;  %s576_s25 = scalar_lea.hbm %s821_s2, 80  ;;  %s566_s7 = int_to_ptr.hbm [resolvable:$true] %s565_s7 }
 0x1c2   : > { %s572_s8 = scalar_lea.hbm %s566_s7, %s548_s4  ;;  %p577_p12 = scmp.lt.s32.totalorder %s566_s7, %s821_s2 }
 0x1c3   : > { %p573_p9 = scmp.ne.s32.totalorder %s566_s7, %s572_s8  ;;  %p578_p13 = scmp.lt.s32.totalorder %s576_s25, %s572_s8 }
 0x1c5   : > { %p574_p10 = pnand %p573_p9, %p762_p2  ;;  %p579_p0 = por %p578_p13, %p577_p12 }
 0x1c7   : > { %p575_p11 = pneg %p574_p10 }
 0x1c9   : > { %p580_p1 = pnand %p579_p0, %p575_p11 }
 0x1cb   : > { %583 = shalt.err (!%p580_p1)
}
 0x1cc   : > { %s641_s28 = smov 128   ;;  %s642_s29 = smov 8  }
 0x1cd   : > { %360 = dma.vmem_to_hbm [thread:$0]  (%p762_p2), %s772_s26, %s478_s24, %s774_s30, %s753_s15, %s641_s28, %s641_s28, %s642_s29  }
 0x1ce PF: > { %p486_p3 = scmp.ge.s32.totalorder %s635_s14, 2  ;;  %s369_s3 = sand.u32 1, %s615_s9  }
 0x1cf   : > { %s370_s4 = scalar_lea.sflag [#allocation3], %s369_s3 }
 0x1d0   : > { %p483_p4 = pnand %p486_p3, %p705_p8 }
 0x1d2   : > { %p484_p5 = pneg %p483_p4 }
 0x1d4   : > { %610 = dma.done.wait (%p484_p5), %s370_s4, 768  }
 0x1d5   : > { %612 = vsyncadd (%p484_p5), %s370_s4, 4294966528  ;;  %s15_s14 = sadd.s32 1, %s635_s14   ;;  %s825_s9 = smov %s619_s10 }
 0x1d6   : > { %p12_p6 = scmp.ge.s32.totalorder %s15_s14, 4   ;;  %s826_s10 = smov %s623_s11 }
 0x1d7   : > { %s827_s11 = smov %s711_s22  ;;  %s828_s12 = smov %s631_s13 }
 0x1d8   : > { %s829_s13 = smov %s831_s17  ;;  %14 = sbr.rel (!%p12_p6) target bundleno = 4 (0x4), region = 84 }
 0x1dd   :  { %376 = vsyncpa [#allocation3], 1 }
 0x1de   :  { %378 = vsyncpa [#allocation3 + $0x1], 1 }

</bundles_post_ra>
